<compile_context>
chip_gen: v6e
topology: v6e:2x2x1
jax: 0.10.0
libtpu: 0.0.40
codegen_flags: <defaults>
</compile_context>

<pallas_src>
import functools

import jax
import jax.numpy as jnp
from jax import lax
from jax.experimental import pallas as pl
from jax.experimental.pallas import tpu as pltpu


def _round_up(x, m):
    return (x + m - 1) // m * m


def _np_cce_kernel(y_pred_ref, y_true_ref, out_ref, *,
                   p_indices, alpha, penalty_scale, eps,
                   batch_size, block_rows, tiles_per_split, one_hot):
    c = pl.program_id(0)          # batch split ("parallel" -> one per TC on v7x)
    i = pl.program_id(1)          # tile within split ("arbitrary", carries accumulator)

    @pl.when(i == 0)
    def _():
        out_ref[...] = jnp.zeros_like(out_ref)

    y_pred = y_pred_ref[...].astype(jnp.float32)   # (TB, C) softmax probabilities
    y_true = y_true_ref[...].astype(jnp.float32)   # (TB, C) labels
    TB, C = y_pred.shape

    # ---- penalty sample weight w = [argmax(y_true) in p_indices], shape (TB, 1) ----
    if one_hot:
        # Hard-label fast path (gated; changes semantics for soft labels).
        w = jnp.zeros((TB, 1), jnp.float32)
        for p in p_indices:
            w = w + y_true[:, p:p + 1]
    else:
        col = lax.broadcasted_iota(jnp.int32, (TB, C), 1).astype(jnp.float32)
        row_max = jnp.max(y_true, axis=-1, keepdims=True)
        # first index attaining the max (matches jnp.argmax / torch.argmax)
        idx = jnp.min(jnp.where(y_true == row_max, col, float(C)),
                      axis=-1, keepdims=True)                              # (TB, 1)
        w = jnp.zeros((TB, 1), jnp.float32)
        for p in p_indices:
            w = w + (idx == float(p)).astype(jnp.float32)

    # ---- categorical cross-entropy term ----
    if one_hot:
        p_sel = jnp.sum(y_true * y_pred, axis=-1, keepdims=True)
        cce = -jnp.log(jnp.clip(p_sel, eps, 1.0 - eps))                    # 1 log / row
    else:
        log_p = jnp.log(jnp.clip(y_pred, eps, 1.0 - eps))                  # needed for soft labels
        cce = -jnp.sum(y_true * log_p, axis=-1, keepdims=True)             # (TB, 1)

    # ---- negative-penalty term: only the P penalty columns (static slices) ----
    pen = jnp.zeros((TB, 1), jnp.float32)
    for p in p_indices:
        pen = pen - jnp.log(jnp.clip(1.0 - y_pred[:, p:p + 1], eps, 1.0 - eps))
    pen = pen * (1.0 / penalty_scale)

    losses = w * cce + alpha * ((1.0 - w) * pen)                           # (TB, 1)

    # Mask rows past the true batch size (ragged last block / clamped duplicate tile).
    tile = c * tiles_per_split + i
    row = tile * block_rows + lax.broadcasted_iota(jnp.int32, (TB, 1), 0)
    losses = jnp.where(row < batch_size, losses, 0.0)

    # Accumulate into the resident output block (broadcast (1,1) -> (8,128)).
    out_ref[...] += jnp.sum(losses, axis=0, keepdims=True)


def negative_penalty_cce(y_pred, y_true, *, class_num, p_indices,
                         alpha=1.0, penalty_scale=None, eps=1e-10,
                         reduction='mean', block_rows=None,
                         assume_one_hot=False):
    """Pallas equivalent of NegativePenaltyCategoricalCrossentropy.forward
    (from_where='softmax'); reduction in {'mean', 'sum'}."""
    if penalty_scale is None:
        penalty_scale = float(len(p_indices))
    B, C = y_pred.shape
    assert y_true.shape == (B, C)
    assert C == class_num

    if reduction == 'mean':
        inv_reduce = 1.0 / float(B)
    elif reduction == 'sum':
        inv_reduce = 1.0
    else:
        # TODO(synk): reduction='none' needs a (B,)-shaped output; not implemented here.
        raise ValueError("reduction must be 'mean' or 'sum'")

    # ---- per-generation VMEM budget (v7x: 64 MiB/TC; v5e/v6e: 128 MiB) ----
    try:
        phys_vmem = int(pltpu.get_tpu_info().vmem_capacity_bytes)
    except Exception:
        phys_vmem = 64 * 1024 * 1024                 # conservative (v7x-class)
    if phys_vmem <= 64 * 1024 * 1024:
        vmem_limit = 48 * 1024 * 1024                # headroom under v7x's 64 MiB/TC
    else:
        vmem_limit = 100 * 1024 * 1024               # v5e / v6e: 128 MiB physical

    ip = jnp.dtype(y_pred.dtype).itemsize
    it = jnp.dtype(y_true.dtype).itemsize
    # Sublane packing: 8 rows for 4-byte, 16 for 2-byte, 32 for 1-byte dtypes.
    pack = 8 * (4 // max(1, min(ip, it, 4)))

    if block_rows is None:
        # Byte-budgeted tiles: double-buffered native-dtype inputs plus ~6
        # tile-sized f32 temporaries must fit within ~75% of the VMEM limit.
        per_row = 2 * C * (ip + it) + 6 * C * 4
        block_rows = max(pack, int(vmem_limit * 0.75) // max(per_row, 1))
    block_rows = max(pack, (block_rows // pack) * pack)
    block_rows = min(block_rows, _round_up(B, pack))

    num_tiles = pl.cdiv(B, block_rows)               # no wrapper jnp.pad
    num_splits = 2 if num_tiles > 1 else 1           # 2-TC split on v7x; harmless on 1-TC
    tiles_per_split = pl.cdiv(num_tiles, num_splits)

    def in_map(c, i):
        # Clamp fully-out-of-range tiles (odd tile counts); the kernel's row
        # mask (computed from the unclamped tile index) zeroes their work.
        t = jnp.minimum(c * tiles_per_split + i, num_tiles - 1)
        return (t, 0)

    kernel = functools.partial(
        _np_cce_kernel,
        p_indices=tuple(int(p) for p in p_indices),
        alpha=float(alpha),
        penalty_scale=float(penalty_scale),
        eps=float(eps),
        batch_size=B,
        block_rows=int(block_rows),
        tiles_per_split=int(tiles_per_split),
        one_hot=bool(assume_one_hot),
    )

    partials = pl.pallas_call(
        kernel,
        # One (8,128) partial-sum block per split (keeps block dims (8,128)-tiled).
        out_shape=jax.ShapeDtypeStruct((num_splits * 8, 128), jnp.float32),
        grid_spec=pltpu.PrefetchScalarGridSpec(
            num_scalar_prefetch=0,
            grid=(num_splits, tiles_per_split),
            in_specs=[
                pl.BlockSpec((block_rows, C), in_map),
                pl.BlockSpec((block_rows, C), in_map),
            ],
            out_specs=pl.BlockSpec((8, 128), lambda c, i: (c, 0)),
        ),
        compiler_params=pltpu.CompilerParams(
            dimension_semantics=("parallel", "arbitrary"),
            vmem_limit_bytes=int(vmem_limit),
        ),
    )(y_pred, y_true)   # native-dtype streaming; upcast to f32 on the VPU in-kernel

    # Each split's block holds its partial sum broadcast over the block.
    return jnp.sum(partials[0::8, 0]) * inv_reduce


def _reference(y_pred, y_true, *, class_num, p_indices, alpha, penalty_scale, eps,
               reduction='mean'):
    # Pure-JAX reference reproducing the PyTorch semantics (softmax path).
    penalty_label = jnp.array(
        [1.0 if i in p_indices else 0.0 for i in range(class_num)], jnp.float32)
    idx = jnp.argmax(y_true, axis=-1)
    w = penalty_label[idx]
    cce = jnp.sum(-y_true * jnp.log(jnp.clip(y_pred, eps, 1.0 - eps)), axis=-1)
    pen = jnp.sum(-penalty_label[None, :] *
                  jnp.log(jnp.clip(1.0 - y_pred, eps, 1.0 - eps)), axis=-1) / penalty_scale
    losses = w * cce + alpha * ((1.0 - w) * pen)
    return jnp.mean(losses) if reduction == 'mean' else jnp.sum(losses)


if __name__ == "__main__":
    C = 8
    p_indices = [1, 3]
    alpha = 1.0
    eps = 1e-10

    k1, k2, k3, k4 = jax.random.split(jax.random.PRNGKey(0), 4)

    # ---- test 1: small single-tile batch, mean + sum reductions ----
    B = 8
    y_pred = jax.nn.softmax(jax.random.normal(k1, (B, C), dtype=jnp.float32), axis=-1)
    y_true = jax.nn.one_hot(jax.random.randint(k2, (B,), 0, C), C, dtype=jnp.float32)

    loss = jax.block_until_ready(
        negative_penalty_cce(y_pred, y_true, class_num=C, p_indices=p_indices,
                             alpha=alpha, eps=eps))
    ref = _reference(y_pred, y_true, class_num=C, p_indices=p_indices, alpha=alpha,
                     penalty_scale=float(len(p_indices)), eps=eps)
    assert jnp.allclose(loss, ref, rtol=2e-5, atol=1e-6), (loss, ref)

    loss_s = jax.block_until_ready(
        negative_penalty_cce(y_pred, y_true, class_num=C, p_indices=p_indices,
                             alpha=alpha, eps=eps, reduction='sum'))
    ref_s = _reference(y_pred, y_true, class_num=C, p_indices=p_indices, alpha=alpha,
                       penalty_scale=float(len(p_indices)), eps=eps, reduction='sum')
    assert jnp.allclose(loss_s, ref_s, rtol=2e-5, atol=1e-6), (loss_s, ref_s)

    # ---- test 2: ragged batch (B % block_rows != 0), multi-tile grid + 2-way split ----
    B2 = 37
    y_pred2 = jax.nn.softmax(jax.random.normal(k3, (B2, C), dtype=jnp.float32), axis=-1)
    y_true2 = jax.nn.one_hot(jax.random.randint(k4, (B2,), 0, C), C, dtype=jnp.float32)

    ref2 = _reference(y_pred2, y_true2, class_num=C, p_indices=p_indices, alpha=alpha,
                      penalty_scale=float(len(p_indices)), eps=eps)

    loss2 = jax.block_until_ready(
        negative_penalty_cce(y_pred2, y_true2, class_num=C, p_indices=p_indices,
                             alpha=alpha, eps=eps, block_rows=8))
    assert jnp.allclose(loss2, ref2, rtol=2e-5, atol=1e-6), (loss2, ref2)

    # hard-label fast path (1 log/row CE, no argmax) must agree for one-hot labels
    loss2_oh = jax.block_until_ready(
        negative_penalty_cce(y_pred2, y_true2, class_num=C, p_indices=p_indices,
                             alpha=alpha, eps=eps, block_rows=8, assume_one_hot=True))
    assert jnp.allclose(loss2_oh, ref2, rtol=2e-5, atol=1e-6), (loss2_oh, ref2)

    print("KERNEL_OK")
</pallas_src>

<mosaic_0001>
module attributes {stable_mosaic.version = 11 : i64} {
  func.func @_np_cce_kernel(%arg0: i32, %arg1: i32, %arg2: memref<8x8xf32, #tpu.memory_space<vmem>>, %arg3: memref<8x8xf32, #tpu.memory_space<vmem>>, %arg4: memref<8x128xf32, #tpu.memory_space<vmem>>) attributes {dimension_semantics = [#tpu.dimension_semantics<parallel>, #tpu.dimension_semantics<arbitrary>], iteration_bounds = array<i64: 1, 1>, scalar_prefetch = 0 : i64, scratch_operands = 0 : i64, tpu.core_type = #tpu.core_type<tc>, window_params = [{transform_indices = @transform_0, window_bounds = array<i64: 8, 8>}, {transform_indices = @transform_1, window_bounds = array<i64: 8, 8>}, {transform_indices = @transform_2, window_bounds = array<i64: 8, 128>}]} {
    %c0_i32 = arith.constant 0 : i32
    %0 = arith.cmpi eq, %arg1, %c0_i32 : i32
    %1 = arith.extui %0 : i1 to i32
    %c0_i32_0 = arith.constant 0 : i32
    %2 = arith.cmpi ne, %1, %c0_i32_0 : i32
    scf.if %2 {
      %cst_30 = arith.constant 0.000000e+00 : f32
      %80 = vector.broadcast %cst_30 : f32 to vector<8x128xf32>
      %c0_31 = arith.constant 0 : index
      %c0_32 = arith.constant 0 : index
      %81 = vector.load %arg4[%c0_31, %c0_32] : memref<8x128xf32, #tpu.memory_space<vmem>>, vector<8x128xf32>
      tpu.vector_store %arg4[%c0_31, %c0_32], %80 {strides = array<i32>} : memref<8x128xf32, #tpu.memory_space<vmem>>, vector<8x128xf32>,
    } else {
    }
    %c0 = arith.constant 0 : index
    %c0_1 = arith.constant 0 : index
    %3 = vector.load %arg2[%c0, %c0_1] : memref<8x8xf32, #tpu.memory_space<vmem>>, vector<8x8xf32>
    %c0_2 = arith.constant 0 : index
    %c0_3 = arith.constant 0 : index
    %4 = vector.load %arg3[%c0_2, %c0_3] : memref<8x8xf32, #tpu.memory_space<vmem>>, vector<8x8xf32>
    %5 = tpu.iota {dimensions = array<i32: 1>} : vector<8x8xi32>
    %6 = arith.sitofp %5 : vector<8x8xi32> to vector<8x8xf32>
    %cst = arith.constant dense<0xFF800000> : vector<8xf32>
    %7 = vector.multi_reduction <maximumf>, %4, %cst [1] : vector<8x8xf32> to vector<8xf32>
    %8 = vector.shape_cast %7 : vector<8xf32> to vector<8x1xf32>
    %9 = vector.broadcast %8 : vector<8x1xf32> to vector<8x8xf32>
    %10 = arith.cmpf oeq, %4, %9 : vector<8x8xf32>
    %cst_4 = arith.constant 8.000000e+00 : f32
    %11 = vector.broadcast %cst_4 : f32 to vector<8x8xf32>
    %12 = arith.select %10, %6, %11 : vector<8x8xi1>, vector<8x8xf32>
    %cst_5 = arith.constant dense<0x7F800000> : vector<8xf32>
    %13 = vector.multi_reduction <minimumf>, %12, %cst_5 [1] : vector<8x8xf32> to vector<8xf32>
    %14 = vector.shape_cast %13 : vector<8xf32> to vector<8x1xf32>
    %cst_6 = arith.constant 0.000000e+00 : f32
    %15 = vector.broadcast %cst_6 : f32 to vector<8x1xf32>
    %cst_7 = arith.constant 1.000000e+00 : f32
    %16 = vector.broadcast %cst_7 : f32 to vector<8x1xf32>
    %17 = arith.cmpf oeq, %14, %16 : vector<8x1xf32>
    %18 = arith.extui %17 : vector<8x1xi1> to vector<8x1xi32>
    %19 = arith.sitofp %18 : vector<8x1xi32> to vector<8x1xf32>
    %20 = arith.addf %15, %19 : vector<8x1xf32>
    %cst_8 = arith.constant 3.000000e+00 : f32
    %21 = vector.broadcast %cst_8 : f32 to vector<8x1xf32>
    %22 = arith.cmpf oeq, %14, %21 : vector<8x1xf32>
    %23 = arith.extui %22 : vector<8x1xi1> to vector<8x1xi32>
    %24 = arith.sitofp %23 : vector<8x1xi32> to vector<8x1xf32>
    %25 = arith.addf %20, %24 : vector<8x1xf32>
    %cst_9 = arith.constant 1.000000e-10 : f32
    %cst_10 = arith.constant 1.000000e+00 : f32
    %26 = vector.broadcast %cst_9 : f32 to vector<8x8xf32>
    %27 = arith.maximumf %26, %3 : vector<8x8xf32>
    %28 = vector.broadcast %cst_10 : f32 to vector<8x8xf32>
    %29 = arith.minimumf %28, %27 : vector<8x8xf32>
    %30 = math.log %29 : vector<8x8xf32>
    %31 = arith.mulf %4, %30 : vector<8x8xf32>
    %cst_11 = arith.constant dense<0.000000e+00> : vector<8xf32>
    %32 = vector.multi_reduction <add>, %31, %cst_11 [1] : vector<8x8xf32> to vector<8xf32>
    %33 = vector.shape_cast %32 : vector<8xf32> to vector<8x1xf32>
    %cst_12 = arith.constant 0.000000e+00 : f32
    %34 = vector.broadcast %cst_12 : f32 to vector<8x1xf32>
    %35 = arith.subf %34, %33 : vector<8x1xf32>
    %cst_13 = arith.constant 0.000000e+00 : f32
    %36 = vector.broadcast %cst_13 : f32 to vector<8x1xf32>
    %37 = vector.extract_strided_slice %3 {offsets = [0, 1], sizes = [8, 1], strides = [1, 1]} : vector<8x8xf32> to vector<8x1xf32>
    %cst_14 = arith.constant 1.000000e+00 : f32
    %38 = vector.broadcast %cst_14 : f32 to vector<8x1xf32>
    %39 = arith.subf %38, %37 : vector<8x1xf32>
    %cst_15 = arith.constant 1.000000e-10 : f32
    %cst_16 = arith.constant 1.000000e+00 : f32
    %40 = vector.broadcast %cst_15 : f32 to vector<8x1xf32>
    %41 = arith.maximumf %40, %39 : vector<8x1xf32>
    %42 = vector.broadcast %cst_16 : f32 to vector<8x1xf32>
    %43 = arith.minimumf %42, %41 : vector<8x1xf32>
    %44 = math.log %43 : vector<8x1xf32>
    %45 = arith.subf %36, %44 : vector<8x1xf32>
    %46 = vector.extract_strided_slice %3 {offsets = [0, 3], sizes = [8, 1], strides = [1, 1]} : vector<8x8xf32> to vector<8x1xf32>
    %cst_17 = arith.constant 1.000000e+00 : f32
    %47 = vector.broadcast %cst_17 : f32 to vector<8x1xf32>
    %48 = arith.subf %47, %46 : vector<8x1xf32>
    %cst_18 = arith.constant 1.000000e-10 : f32
    %cst_19 = arith.constant 1.000000e+00 : f32
    %49 = vector.broadcast %cst_18 : f32 to vector<8x1xf32>
    %50 = arith.maximumf %49, %48 : vector<8x1xf32>
    %51 = vector.broadcast %cst_19 : f32 to vector<8x1xf32>
    %52 = arith.minimumf %51, %50 : vector<8x1xf32>
    %53 = math.log %52 : vector<8x1xf32>
    %54 = arith.subf %45, %53 : vector<8x1xf32>
    %cst_20 = arith.constant 5.000000e-01 : f32
    %55 = vector.broadcast %cst_20 : f32 to vector<8x1xf32>
    %56 = arith.mulf %54, %55 : vector<8x1xf32>
    %57 = arith.mulf %25, %35 : vector<8x1xf32>
    %cst_21 = arith.constant 1.000000e+00 : f32
    %58 = vector.broadcast %cst_21 : f32 to vector<8x1xf32>
    %59 = arith.subf %58, %25 : vector<8x1xf32>
    %60 = arith.mulf %59, %56 : vector<8x1xf32>
    %cst_22 = arith.constant 1.000000e+00 : f32
    %61 = vector.broadcast %cst_22 : f32 to vector<8x1xf32>
    %62 = arith.mulf %61, %60 : vector<8x1xf32>
    %63 = arith.addf %57, %62 : vector<8x1xf32>
    %c1_i32 = arith.constant 1 : i32
    %64 = arith.muli %arg0, %c1_i32 : i32
    %65 = arith.addi %64, %arg1 : i32
    %c8_i32 = arith.constant 8 : i32
    %66 = arith.muli %65, %c8_i32 : i32
    %67 = tpu.iota {dimensions = array<i32: 0>} : vector<8x1xi32>
    %68 = vector.broadcast %66 : i32 to vector<8x1xi32>
    %69 = arith.addi %68, %67 : vector<8x1xi32>
    %c8_i32_23 = arith.constant 8 : i32
    %70 = vector.broadcast %c8_i32_23 : i32 to vector<8x1xi32>
    %71 = arith.cmpi slt, %69, %70 : vector<8x1xi32>
    %cst_24 = arith.constant 0.000000e+00 : f32
    %72 = vector.broadcast %cst_24 : f32 to vector<8x1xf32>
    %73 = arith.select %71, %63, %72 : vector<8x1xi1>, vector<8x1xf32>
    %c0_25 = arith.constant 0 : index
    %c0_26 = arith.constant 0 : index
    %74 = vector.load %arg4[%c0_25, %c0_26] : memref<8x128xf32, #tpu.memory_space<vmem>>, vector<8x128xf32>
    %cst_27 = arith.constant dense<0.000000e+00> : vector<1xf32>
    %75 = vector.multi_reduction <add>, %73, %cst_27 [0] : vector<8x1xf32> to vector<1xf32>
    %76 = vector.shape_cast %75 : vector<1xf32> to vector<1x1xf32>
    %77 = vector.broadcast %76 : vector<1x1xf32> to vector<8x128xf32>
    %78 = arith.addf %74, %77 : vector<8x128xf32>
    %c0_28 = arith.constant 0 : index
    %c0_29 = arith.constant 0 : index
    %79 = vector.load %arg4[%c0_28, %c0_29] : memref<8x128xf32, #tpu.memory_space<vmem>>, vector<8x128xf32>
    tpu.vector_store %arg4[%c0_28, %c0_29], %78 {strides = array<i32>} : memref<8x128xf32, #tpu.memory_space<vmem>>, vector<8x128xf32>,
    return
  }
  func.func @transform_0(%arg0: i32, %arg1: i32) -> (i32, i32) {
    %c1_i32 = arith.constant 1 : i32
    %0 = arith.muli %arg0, %c1_i32 : i32
    %1 = arith.addi %0, %arg1 : i32
    %c0_i32 = arith.constant 0 : i32
    %2 = arith.minsi %1, %c0_i32 : i32
    %c0_i32_0 = arith.constant 0 : i32
    %c0_i32_1 = arith.constant 0 : i32
    return %2, %c0_i32_0 : i32, i32
  }
  func.func @transform_1(%arg0: i32, %arg1: i32) -> (i32, i32) {
    %c1_i32 = arith.constant 1 : i32
    %0 = arith.muli %arg0, %c1_i32 : i32
    %1 = arith.addi %0, %arg1 : i32
    %c0_i32 = arith.constant 0 : i32
    %2 = arith.minsi %1, %c0_i32 : i32
    %c0_i32_0 = arith.constant 0 : i32
    %c0_i32_1 = arith.constant 0 : i32
    return %2, %c0_i32_0 : i32, i32
  }
  func.func @transform_2(%arg0: i32, %arg1: i32) -> (i32, i32) {
    %c0_i32 = arith.constant 0 : i32
    %c0_i32_0 = arith.constant 0 : i32
    return %arg0, %c0_i32 : i32, i32
  }
}

</mosaic_0001>

<bundles_post_ra>
// kernel: tpu_custom_call.1
= control target key start
LH: loop header
LB: loop body
LE: loop exit
PB: predicated region body
PF: predicated region fallthrough
CT: control target
= control target key end

     0   :  { %7 = vsyncpa [#allocation3], 0  ;;  %s260_s0 = inlined_call_operand.hbm [shape: f32[8,8], index: 0, kind: input, shape index: {}]   ;;  %s261_s1 = inlined_call_operand.hbm [shape: f32[8,8], index: 1, kind: input, shape index: {}]   ;;  %s262_s2 = inlined_call_operand.hbm [shape: f32[8,128], index: 2, kind: output, shape index: {}]  }
   0x1   :  { %8 = vsyncpa [#allocation6], 0 }
   0x2   :  { %9 = vsyncpa [#allocation4], 0  ;;  %s227_s9 = smov [#allocation2]   ;;  %s228_s11 = smov [#allocation5]  }
   0x3   :  { %s21_s10 = sshll.u32 %s227_s9, 4  ;;  %s36_s12 = sshll.u32 %s228_s11, 4  ;;  %s22_s10 = int_to_ptr.vmem [resolvable:$true] %s21_s10  ;;  %s37_s12 = int_to_ptr.vmem [resolvable:$true] %s36_s12 }
   0x4   :  { %s169_s13 = scalar_lea.vmem %s22_s10, 128  ;;  %p174_p1 = scmp.lt.s32.totalorder %s22_s10, %s22_s10 }
   0x5   :  { %p170_p0 = scmp.ne.s32.totalorder %s22_s10, %s169_s13  ;;  %p175_p2 = scmp.lt.s32.totalorder %s169_s13, %s169_s13 }
   0x7   :  { %p176_p3 = por %p175_p2, %p174_p1 }
   0x9   :  { %p177_p4 = pnand %p176_p3, %p170_p0 }
   0xb   :  { %180 = shalt.err (!%p177_p4)
}
   0xc   :  { %24 = dma.hbm_to_vmem [thread:$0]  %s260_s0, 128, %s22_s10, [#allocation3]  }
   0xd   :  { %s189_s16 = scalar_lea.vmem %s37_s12, 128  ;;  %p194_p6 = scmp.lt.s32.totalorder %s37_s12, %s37_s12 }
   0xe   :  { %p190_p5 = scmp.ne.s32.totalorder %s37_s12, %s189_s16  ;;  %p195_p7 = scmp.lt.s32.totalorder %s189_s16, %s189_s16 }
  0x10   :  { %p196_p8 = por %p195_p7, %p194_p6 }
  0x12   :  { %p197_p9 = pnand %p196_p8, %p190_p5 }
  0x14   :  { %200 = shalt.err (!%p197_p9)
}
  0x15   :  { %39 = dma.hbm_to_vmem [thread:$0]  %s261_s1, 128, %s37_s12, [#allocation6]  }
  0x16   :  { %221 = dma.done.wait [#allocation3], 128  }
  0x17   :  { %222 = vsyncadd [#allocation3], 4294967168 }
  0x18   :  { %223 = dma.done.wait [#allocation6], 128  }
  0x19   :  { %224 = vsyncadd [#allocation6], 4294967168  ;;  %vm62_vm0 = vcmask 64512   ;;  %v58_v0 = vld [vmem:[#allocation5] sm:$0xff]  ;;  %v57_v1 = vld [vmem:[#allocation2] sm:$0xff]  ;;  %s229_s0 = smov 126   ;;  %v59_v14 = vlaneseq }
  0x1a   :  { %v63_v2 = vsel %vm62_vm0, %v58_v0, -inf  ;;  %v79_v3 = vmax.f32 %v57_v1, 1e-10  ;;  %v88_v5 = vsub.f32 1.0, %v57_v1  ;;  %v230_v20 = vmov 1   ;;  %s232_s1 = smov [#allocation7]  }
  0x1b   :  { %64 = vmax.xlane.f32.xlu0 %v63_v2  ;;  %v60_v15 = vand.u32 127, %v59_v14  ;;  %v231_v26 = vmov 0.0   ;;  %vm113_vm4 = vcmask 15368   ;;  %s134_s19 = sshll.u32 %s232_s1, 4  ;;  %s135_s19 = int_to_ptr.vmem [resolvable:$true] %s134_s19 }
  0x1c   :  { %v80_v4 = vmin.f32 %v79_v3, 1.0  ;;  %v89_v6 = vmax.f32 %v88_v5, 1e-10  ;;  %156 = vset.pattern.permute.xlu0 %v230_v20  ;;  %s201_s20 = scalar_lea.vmem %s135_s19, 128  ;;  %p206_p11 = scmp.lt.s32.totalorder %s135_s19, %s135_s19 }
  0x1d   :  { %v61_v16 = vcvt.s32.f32 %v60_v15  ;;  %p202_p10 = scmp.ne.s32.totalorder %s135_s19, %s201_s20  ;;  %p207_p12 = scmp.lt.s32.totalorder %s201_s20, %s201_s20 }
  0x1e   :  { %157 = vlog2.f32 %v80_v4  ;;  %v90_v9 = vmin.f32 %v89_v6, 1.0 }
  0x1f   :  { %p208_p13 = por %p207_p12, %p206_p11 }
  0x20   :  { %159 = vlog2.f32 %v90_v9 }
  0x21   :  { %p209_p0 = pnand %p208_p13, %p202_p10 }
  0x2b   :  { %v158_v7 = vpop.eup %157 }
  0x2c   :  { %v82_v8 = vmul.f32 0.6931472, %v158_v7 }
  0x2d   :  { %v160_v12 = vpop.eup %159 }
  0x2e   :  { %v83_v10 = vmul.f32 %v82_v8, %v58_v0  ;;  %v92_v13 = vmul.f32 0.6931472, %v160_v12 }
  0x30   :  { %v84_v11 = vsel %vm62_vm0, %v83_v10, 0.0  ;;  %v93_v22 = vsub.f32 0.0, %v92_v13 }
  0x31   :  { %85 = vadd.xlane.f32.xlu1 %v84_v11 }
  0x42   :  { %95 = vrot.lane.b32.xlu1 %v92_v13, %s229_s0 }
  0xa4   :  { %v65_v17 = vpop.xlane.xlu0 %64 }
  0xa5   :  { %vm66_vm1 = vcmp.eq.f32.partialorder %v58_v0, %v65_v17 }
  0xa6   :  { %v67_v18 = vsel %vm66_vm1, %v61_v16, 8.0 }
  0xa7   :  { %v68_v19 = vsel %vm62_vm0, %v67_v18, inf }
  0xa8   :  { %69 = vmin.xlane.f32.xlu0 %v68_v19 }
  0xba   :  { %v86_v21 = vpop.xlane.xlu1 %85 }
  0xbb   :  { %v87_v31 = vsub.f32 0.0, %v86_v21 }
  0xbe   :  { %v96_v23 = vpop.permute.xlu1 %95 }
  0xbf   :  { %v98_v24 = vsub.f32 %v93_v22, %v96_v23 }
  0xc1   :  { %v99_v30 = vmul.f32 0.5, %v98_v24 }
 0x131   :  { %v70_v25 = vpop.xlane.xlu0 %69 }
 0x132   :  { %vm71_vm2 = vcmp.eq.f32.partialorder %v70_v25, 1.0  ;;  %vm75_vm3 = vcmp.eq.f32.partialorder %v70_v25, 3.0 }
 0x133   :  { %v148_v27 = vsel %vm71_vm2, 1.0, %v231_v26  ;;  %v149_v28 = vsel %vm75_vm3, 1.0, %v231_v26 }
 0x134   :  { %v78_v29 = vadd.f32 %v149_v28, %v148_v27 }
 0x136   :  { %v101_v32 = vsub.f32 1.0, %v78_v29  ;;  %v100_v33 = vmul.f32 %v87_v31, %v78_v29 }
 0x138   :  { %v102_v34 = vmul.f32 %v101_v32, %v99_v30 }
 0x13a   :  { %v103_v35 = vadd.f32 %v102_v34, %v100_v33 }
 0x13c   :  { %v114_v36 = vsel %vm113_vm4, %v103_v35, 0.0 }
 0x13d   :  { %v115_v37 = vrot.slane %v114_v36, 4 }
 0x13f   :  { %v116_v38 = vadd.f32 %v115_v37, %v114_v36 }
 0x141   :  { %v117_v39 = vrot.slane %v116_v38, 2 }
 0x143   :  { %v118_v40 = vadd.f32 %v117_v39, %v116_v38 }
 0x145   :  { %v119_v41 = vrot.slane %v118_v40, 1 }
 0x147   :  { %v120_v42 = vadd.f32 %v119_v41, %v118_v40 }
 0x149   :  { %123 = vperm.xlu0 %156, %v120_v42  }
 0x1c4   :  { %v124_v43 = vpop.permute.xlu0 %123 }
 0x1c5   :  { %127 = vst [vmem:[#allocation7] sm:$0xff] %v124_v43 }
 0x1c6   :  { %212 = shalt.err (!%p209_p0)
}
 0x1c7   :  { %137 = dma.vmem_to_hbm [thread:$0]  %s135_s19, 128, %s262_s2, [#allocation4]  }
 0x1c8   :  { %225 = dma.done.wait [#allocation4], 128  }
 0x1c9   :  { %226 = vsyncadd [#allocation4], 4294967168 }
 0x1ca   :  { %141 = vsyncpa [#allocation3], 1 }
 0x1cb   :  { %142 = vsyncpa [#allocation6], 1 }
 0x1cc   :  { %143 = vsyncpa [#allocation4], 1 }

</bundles_post_ra>
